<compile_context>
chip_gen: v7x
topology: tpu7x:2x2x1
jax: 0.10.0
libtpu: 0.0.40
codegen_flags: <defaults>
</compile_context>

<pallas_src>
import functools

import jax
import jax.numpy as jnp
from jax.experimental import pallas as pl
from jax.experimental.pallas import tpu as pltpu

HIDDEN = 16   # hidden width of the MLP (Linear(1, 16))
LANES = 128   # TPU lane width


def dvn_kernel(params_ref, x_ref, o_ref):
    # params_ref: SMEM (3*HIDDEN + 1,) = [w1 | b1 | w2 | b2]
    # x_ref/o_ref: VMEM (TILE_ROWS, 128), one sample per element (lane-dense)
    x = x_ref[...]
    acc = jnp.zeros_like(x)
    for j in range(HIDDEN):  # static unroll over the 16 hidden units, pure VPU
        w1j = params_ref[j]
        b1j = params_ref[HIDDEN + j]
        w2j = params_ref[2 * HIDDEN + j]
        acc = acc + jnp.maximum(x * w1j + b1j, 0.0) * w2j
    o_ref[...] = acc + params_ref[3 * HIDDEN]  # + b2


def _round_up(a, b):
    return -(-a // b) * b


@functools.partial(jax.jit, static_argnames=("tile_rows",))
def dvn_forward(x, w1, b1, w2, b2, *, tile_rows=512):
    """x: (N, 1) f32; w1: (1, 16); b1: (16,); w2: (16, 1); b2: (1,) -> (N, 1)."""
    n = x.shape[0]

    # Pack the 49 parameters into one SMEM-resident vector (single tiny DMA).
    params = jnp.concatenate(
        [w1.reshape(-1), b1.reshape(-1), w2.reshape(-1), b2.reshape(-1)]
    ).astype(jnp.float32)

    # Lane-dense layout: batch on the lane axis, padded to a whole tile grid.
    rows = -(-n // LANES)                                # ceil(N / 128)
    tr = min(tile_rows, _round_up(max(rows, 1), 8))      # tile rows, multiple of 8
    rows_padded = _round_up(rows, tr)
    n_padded = rows_padded * LANES

    xf = x.reshape(-1).astype(jnp.float32)
    x2d = jnp.pad(xf, (0, n_padded - n)).reshape(rows_padded, LANES)

    out2d = pl.pallas_call(
        dvn_kernel,
        out_shape=jax.ShapeDtypeStruct((rows_padded, LANES), jnp.float32),
        grid=(rows_padded // tr,),
        in_specs=[
            pl.BlockSpec(params.shape, lambda i: (0,),
                         memory_space=pltpu.MemorySpace.SMEM),
            pl.BlockSpec((tr, LANES), lambda i: (i, 0)),
        ],
        out_specs=pl.BlockSpec((tr, LANES), lambda i: (i, 0)),
        compiler_params=pltpu.CompilerParams(
            dimension_semantics=("parallel",)),
    )(params, x2d)

    # Drop pad samples, restore the PyTorch (N, 1) shape.
    return out2d.reshape(-1)[:n].reshape(n, 1)


if __name__ == "__main__":
    key = jax.random.PRNGKey(0)
    k_x, k_w1, k_b1, k_w2, k_b2 = jax.random.split(key, 5)

    # Same data distribution as the PyTorch script: x ~ U(-3, 3), shape (N, 1).
    N = 1000
    x = jax.random.uniform(k_x, (N, 1), jnp.float32) * 6.0 - 3.0

    # nn.Linear-style init: U(-1/sqrt(fan_in), +1/sqrt(fan_in)).
    def linear_init(kw, kb, fan_in, fan_out):
        bound = 1.0 / jnp.sqrt(jnp.float32(fan_in))
        w = jax.random.uniform(kw, (fan_in, fan_out), jnp.float32, -bound, bound)
        b = jax.random.uniform(kb, (fan_out,), jnp.float32, -bound, bound)
        return w, b

    w1, b1 = linear_init(k_w1, k_b1, 1, 16)     # Linear(1, 16)
    w2, b2 = linear_init(k_w2, k_b2, 16, 1)     # Linear(16, 1)

    out = dvn_forward(x, w1, b1, w2, b2)
    jax.block_until_ready(out)

    ref = jnp.maximum(x @ w1 + b1, 0.0) @ w2 + b2
    assert out.shape == (N, 1)
    assert jnp.allclose(out, ref, atol=1e-4, rtol=1e-5), (out, ref)

    # Also exercise the multi-tile "parallel" grid path with a bigger batch.
    N2 = 70_000
    x2 = jax.random.uniform(jax.random.PRNGKey(1), (N2, 1), jnp.float32) * 6.0 - 3.0
    out2 = dvn_forward(x2, w1, b1, w2, b2)
    jax.block_until_ready(out2)
    ref2 = jnp.maximum(x2 @ w1 + b1, 0.0) @ w2 + b2
    assert out2.shape == (N2, 1)
    assert jnp.allclose(out2, ref2, atol=1e-4, rtol=1e-5)

    print("KERNEL_OK")
</pallas_src>

<mosaic_0001>
module attributes {stable_mosaic.version = 11 : i64} {
  func.func @dvn_kernel(%arg0: i32, %arg1: memref<49xf32, #tpu.memory_space<smem>>, %arg2: memref<8x128xf32, #tpu.memory_space<vmem>>, %arg3: memref<8x128xf32, #tpu.memory_space<vmem>>) attributes {dimension_semantics = [#tpu.dimension_semantics<parallel>], iteration_bounds = array<i64: 1>, scalar_prefetch = 0 : i64, scratch_operands = 0 : i64, tpu.core_type = #tpu.core_type<tc>, window_params = [{transform_indices = @transform_0, window_bounds = array<i64: 49>}, {transform_indices = @transform_1, window_bounds = array<i64: 8, 128>}, {transform_indices = @transform_2, window_bounds = array<i64: 8, 128>}]} {
    %c0 = arith.constant 0 : index
    %c0_0 = arith.constant 0 : index
    %0 = vector.load %arg2[%c0, %c0_0] : memref<8x128xf32, #tpu.memory_space<vmem>>, vector<8x128xf32>
    %cst = arith.constant 0.000000e+00 : f32
    %1 = vector.broadcast %cst : f32 to vector<8x128xf32>
    %c0_1 = arith.constant 0 : index
    %2 = memref.load %arg1[%c0_1] : memref<49xf32, #tpu.memory_space<smem>>
    %c16 = arith.constant 16 : index
    %3 = memref.load %arg1[%c16] : memref<49xf32, #tpu.memory_space<smem>>
    %c32 = arith.constant 32 : index
    %4 = memref.load %arg1[%c32] : memref<49xf32, #tpu.memory_space<smem>>
    %5 = vector.broadcast %2 : f32 to vector<8x128xf32>
    %6 = arith.mulf %0, %5 : vector<8x128xf32>
    %7 = vector.broadcast %3 : f32 to vector<8x128xf32>
    %8 = arith.addf %6, %7 : vector<8x128xf32>
    %cst_2 = arith.constant 0.000000e+00 : f32
    %9 = vector.broadcast %cst_2 : f32 to vector<8x128xf32>
    %10 = arith.maximumf %8, %9 : vector<8x128xf32>
    %11 = vector.broadcast %4 : f32 to vector<8x128xf32>
    %12 = arith.mulf %10, %11 : vector<8x128xf32>
    %13 = arith.addf %1, %12 : vector<8x128xf32>
    %c1 = arith.constant 1 : index
    %14 = memref.load %arg1[%c1] : memref<49xf32, #tpu.memory_space<smem>>
    %c17 = arith.constant 17 : index
    %15 = memref.load %arg1[%c17] : memref<49xf32, #tpu.memory_space<smem>>
    %c33 = arith.constant 33 : index
    %16 = memref.load %arg1[%c33] : memref<49xf32, #tpu.memory_space<smem>>
    %17 = vector.broadcast %14 : f32 to vector<8x128xf32>
    %18 = arith.mulf %0, %17 : vector<8x128xf32>
    %19 = vector.broadcast %15 : f32 to vector<8x128xf32>
    %20 = arith.addf %18, %19 : vector<8x128xf32>
    %cst_3 = arith.constant 0.000000e+00 : f32
    %21 = vector.broadcast %cst_3 : f32 to vector<8x128xf32>
    %22 = arith.maximumf %20, %21 : vector<8x128xf32>
    %23 = vector.broadcast %16 : f32 to vector<8x128xf32>
    %24 = arith.mulf %22, %23 : vector<8x128xf32>
    %25 = arith.addf %13, %24 : vector<8x128xf32>
    %c2 = arith.constant 2 : index
    %26 = memref.load %arg1[%c2] : memref<49xf32, #tpu.memory_space<smem>>
    %c18 = arith.constant 18 : index
    %27 = memref.load %arg1[%c18] : memref<49xf32, #tpu.memory_space<smem>>
    %c34 = arith.constant 34 : index
    %28 = memref.load %arg1[%c34] : memref<49xf32, #tpu.memory_space<smem>>
    %29 = vector.broadcast %26 : f32 to vector<8x128xf32>
    %30 = arith.mulf %0, %29 : vector<8x128xf32>
    %31 = vector.broadcast %27 : f32 to vector<8x128xf32>
    %32 = arith.addf %30, %31 : vector<8x128xf32>
    %cst_4 = arith.constant 0.000000e+00 : f32
    %33 = vector.broadcast %cst_4 : f32 to vector<8x128xf32>
    %34 = arith.maximumf %32, %33 : vector<8x128xf32>
    %35 = vector.broadcast %28 : f32 to vector<8x128xf32>
    %36 = arith.mulf %34, %35 : vector<8x128xf32>
    %37 = arith.addf %25, %36 : vector<8x128xf32>
    %c3 = arith.constant 3 : index
    %38 = memref.load %arg1[%c3] : memref<49xf32, #tpu.memory_space<smem>>
    %c19 = arith.constant 19 : index
    %39 = memref.load %arg1[%c19] : memref<49xf32, #tpu.memory_space<smem>>
    %c35 = arith.constant 35 : index
    %40 = memref.load %arg1[%c35] : memref<49xf32, #tpu.memory_space<smem>>
    %41 = vector.broadcast %38 : f32 to vector<8x128xf32>
    %42 = arith.mulf %0, %41 : vector<8x128xf32>
    %43 = vector.broadcast %39 : f32 to vector<8x128xf32>
    %44 = arith.addf %42, %43 : vector<8x128xf32>
    %cst_5 = arith.constant 0.000000e+00 : f32
    %45 = vector.broadcast %cst_5 : f32 to vector<8x128xf32>
    %46 = arith.maximumf %44, %45 : vector<8x128xf32>
    %47 = vector.broadcast %40 : f32 to vector<8x128xf32>
    %48 = arith.mulf %46, %47 : vector<8x128xf32>
    %49 = arith.addf %37, %48 : vector<8x128xf32>
    %c4 = arith.constant 4 : index
    %50 = memref.load %arg1[%c4] : memref<49xf32, #tpu.memory_space<smem>>
    %c20 = arith.constant 20 : index
    %51 = memref.load %arg1[%c20] : memref<49xf32, #tpu.memory_space<smem>>
    %c36 = arith.constant 36 : index
    %52 = memref.load %arg1[%c36] : memref<49xf32, #tpu.memory_space<smem>>
    %53 = vector.broadcast %50 : f32 to vector<8x128xf32>
    %54 = arith.mulf %0, %53 : vector<8x128xf32>
    %55 = vector.broadcast %51 : f32 to vector<8x128xf32>
    %56 = arith.addf %54, %55 : vector<8x128xf32>
    %cst_6 = arith.constant 0.000000e+00 : f32
    %57 = vector.broadcast %cst_6 : f32 to vector<8x128xf32>
    %58 = arith.maximumf %56, %57 : vector<8x128xf32>
    %59 = vector.broadcast %52 : f32 to vector<8x128xf32>
    %60 = arith.mulf %58, %59 : vector<8x128xf32>
    %61 = arith.addf %49, %60 : vector<8x128xf32>
    %c5 = arith.constant 5 : index
    %62 = memref.load %arg1[%c5] : memref<49xf32, #tpu.memory_space<smem>>
    %c21 = arith.constant 21 : index
    %63 = memref.load %arg1[%c21] : memref<49xf32, #tpu.memory_space<smem>>
    %c37 = arith.constant 37 : index
    %64 = memref.load %arg1[%c37] : memref<49xf32, #tpu.memory_space<smem>>
    %65 = vector.broadcast %62 : f32 to vector<8x128xf32>
    %66 = arith.mulf %0, %65 : vector<8x128xf32>
    %67 = vector.broadcast %63 : f32 to vector<8x128xf32>
    %68 = arith.addf %66, %67 : vector<8x128xf32>
    %cst_7 = arith.constant 0.000000e+00 : f32
    %69 = vector.broadcast %cst_7 : f32 to vector<8x128xf32>
    %70 = arith.maximumf %68, %69 : vector<8x128xf32>
    %71 = vector.broadcast %64 : f32 to vector<8x128xf32>
    %72 = arith.mulf %70, %71 : vector<8x128xf32>
    %73 = arith.addf %61, %72 : vector<8x128xf32>
    %c6 = arith.constant 6 : index
    %74 = memref.load %arg1[%c6] : memref<49xf32, #tpu.memory_space<smem>>
    %c22 = arith.constant 22 : index
    %75 = memref.load %arg1[%c22] : memref<49xf32, #tpu.memory_space<smem>>
    %c38 = arith.constant 38 : index
    %76 = memref.load %arg1[%c38] : memref<49xf32, #tpu.memory_space<smem>>
    %77 = vector.broadcast %74 : f32 to vector<8x128xf32>
    %78 = arith.mulf %0, %77 : vector<8x128xf32>
    %79 = vector.broadcast %75 : f32 to vector<8x128xf32>
    %80 = arith.addf %78, %79 : vector<8x128xf32>
    %cst_8 = arith.constant 0.000000e+00 : f32
    %81 = vector.broadcast %cst_8 : f32 to vector<8x128xf32>
    %82 = arith.maximumf %80, %81 : vector<8x128xf32>
    %83 = vector.broadcast %76 : f32 to vector<8x128xf32>
    %84 = arith.mulf %82, %83 : vector<8x128xf32>
    %85 = arith.addf %73, %84 : vector<8x128xf32>
    %c7 = arith.constant 7 : index
    %86 = memref.load %arg1[%c7] : memref<49xf32, #tpu.memory_space<smem>>
    %c23 = arith.constant 23 : index
    %87 = memref.load %arg1[%c23] : memref<49xf32, #tpu.memory_space<smem>>
    %c39 = arith.constant 39 : index
    %88 = memref.load %arg1[%c39] : memref<49xf32, #tpu.memory_space<smem>>
    %89 = vector.broadcast %86 : f32 to vector<8x128xf32>
    %90 = arith.mulf %0, %89 : vector<8x128xf32>
    %91 = vector.broadcast %87 : f32 to vector<8x128xf32>
    %92 = arith.addf %90, %91 : vector<8x128xf32>
    %cst_9 = arith.constant 0.000000e+00 : f32
    %93 = vector.broadcast %cst_9 : f32 to vector<8x128xf32>
    %94 = arith.maximumf %92, %93 : vector<8x128xf32>
    %95 = vector.broadcast %88 : f32 to vector<8x128xf32>
    %96 = arith.mulf %94, %95 : vector<8x128xf32>
    %97 = arith.addf %85, %96 : vector<8x128xf32>
    %c8 = arith.constant 8 : index
    %98 = memref.load %arg1[%c8] : memref<49xf32, #tpu.memory_space<smem>>
    %c24 = arith.constant 24 : index
    %99 = memref.load %arg1[%c24] : memref<49xf32, #tpu.memory_space<smem>>
    %c40 = arith.constant 40 : index
    %100 = memref.load %arg1[%c40] : memref<49xf32, #tpu.memory_space<smem>>
    %101 = vector.broadcast %98 : f32 to vector<8x128xf32>
    %102 = arith.mulf %0, %101 : vector<8x128xf32>
    %103 = vector.broadcast %99 : f32 to vector<8x128xf32>
    %104 = arith.addf %102, %103 : vector<8x128xf32>
    %cst_10 = arith.constant 0.000000e+00 : f32
    %105 = vector.broadcast %cst_10 : f32 to vector<8x128xf32>
    %106 = arith.maximumf %104, %105 : vector<8x128xf32>
    %107 = vector.broadcast %100 : f32 to vector<8x128xf32>
    %108 = arith.mulf %106, %107 : vector<8x128xf32>
    %109 = arith.addf %97, %108 : vector<8x128xf32>
    %c9 = arith.constant 9 : index
    %110 = memref.load %arg1[%c9] : memref<49xf32, #tpu.memory_space<smem>>
    %c25 = arith.constant 25 : index
    %111 = memref.load %arg1[%c25] : memref<49xf32, #tpu.memory_space<smem>>
    %c41 = arith.constant 41 : index
    %112 = memref.load %arg1[%c41] : memref<49xf32, #tpu.memory_space<smem>>
    %113 = vector.broadcast %110 : f32 to vector<8x128xf32>
    %114 = arith.mulf %0, %113 : vector<8x128xf32>
    %115 = vector.broadcast %111 : f32 to vector<8x128xf32>
    %116 = arith.addf %114, %115 : vector<8x128xf32>
    %cst_11 = arith.constant 0.000000e+00 : f32
    %117 = vector.broadcast %cst_11 : f32 to vector<8x128xf32>
    %118 = arith.maximumf %116, %117 : vector<8x128xf32>
    %119 = vector.broadcast %112 : f32 to vector<8x128xf32>
    %120 = arith.mulf %118, %119 : vector<8x128xf32>
    %121 = arith.addf %109, %120 : vector<8x128xf32>
    %c10 = arith.constant 10 : index
    %122 = memref.load %arg1[%c10] : memref<49xf32, #tpu.memory_space<smem>>
    %c26 = arith.constant 26 : index
    %123 = memref.load %arg1[%c26] : memref<49xf32, #tpu.memory_space<smem>>
    %c42 = arith.constant 42 : index
    %124 = memref.load %arg1[%c42] : memref<49xf32, #tpu.memory_space<smem>>
    %125 = vector.broadcast %122 : f32 to vector<8x128xf32>
    %126 = arith.mulf %0, %125 : vector<8x128xf32>
    %127 = vector.broadcast %123 : f32 to vector<8x128xf32>
    %128 = arith.addf %126, %127 : vector<8x128xf32>
    %cst_12 = arith.constant 0.000000e+00 : f32
    %129 = vector.broadcast %cst_12 : f32 to vector<8x128xf32>
    %130 = arith.maximumf %128, %129 : vector<8x128xf32>
    %131 = vector.broadcast %124 : f32 to vector<8x128xf32>
    %132 = arith.mulf %130, %131 : vector<8x128xf32>
    %133 = arith.addf %121, %132 : vector<8x128xf32>
    %c11 = arith.constant 11 : index
    %134 = memref.load %arg1[%c11] : memref<49xf32, #tpu.memory_space<smem>>
    %c27 = arith.constant 27 : index
    %135 = memref.load %arg1[%c27] : memref<49xf32, #tpu.memory_space<smem>>
    %c43 = arith.constant 43 : index
    %136 = memref.load %arg1[%c43] : memref<49xf32, #tpu.memory_space<smem>>
    %137 = vector.broadcast %134 : f32 to vector<8x128xf32>
    %138 = arith.mulf %0, %137 : vector<8x128xf32>
    %139 = vector.broadcast %135 : f32 to vector<8x128xf32>
    %140 = arith.addf %138, %139 : vector<8x128xf32>
    %cst_13 = arith.constant 0.000000e+00 : f32
    %141 = vector.broadcast %cst_13 : f32 to vector<8x128xf32>
    %142 = arith.maximumf %140, %141 : vector<8x128xf32>
    %143 = vector.broadcast %136 : f32 to vector<8x128xf32>
    %144 = arith.mulf %142, %143 : vector<8x128xf32>
    %145 = arith.addf %133, %144 : vector<8x128xf32>
    %c12 = arith.constant 12 : index
    %146 = memref.load %arg1[%c12] : memref<49xf32, #tpu.memory_space<smem>>
    %c28 = arith.constant 28 : index
    %147 = memref.load %arg1[%c28] : memref<49xf32, #tpu.memory_space<smem>>
    %c44 = arith.constant 44 : index
    %148 = memref.load %arg1[%c44] : memref<49xf32, #tpu.memory_space<smem>>
    %149 = vector.broadcast %146 : f32 to vector<8x128xf32>
    %150 = arith.mulf %0, %149 : vector<8x128xf32>
    %151 = vector.broadcast %147 : f32 to vector<8x128xf32>
    %152 = arith.addf %150, %151 : vector<8x128xf32>
    %cst_14 = arith.constant 0.000000e+00 : f32
    %153 = vector.broadcast %cst_14 : f32 to vector<8x128xf32>
    %154 = arith.maximumf %152, %153 : vector<8x128xf32>
    %155 = vector.broadcast %148 : f32 to vector<8x128xf32>
    %156 = arith.mulf %154, %155 : vector<8x128xf32>
    %157 = arith.addf %145, %156 : vector<8x128xf32>
    %c13 = arith.constant 13 : index
    %158 = memref.load %arg1[%c13] : memref<49xf32, #tpu.memory_space<smem>>
    %c29 = arith.constant 29 : index
    %159 = memref.load %arg1[%c29] : memref<49xf32, #tpu.memory_space<smem>>
    %c45 = arith.constant 45 : index
    %160 = memref.load %arg1[%c45] : memref<49xf32, #tpu.memory_space<smem>>
    %161 = vector.broadcast %158 : f32 to vector<8x128xf32>
    %162 = arith.mulf %0, %161 : vector<8x128xf32>
    %163 = vector.broadcast %159 : f32 to vector<8x128xf32>
    %164 = arith.addf %162, %163 : vector<8x128xf32>
    %cst_15 = arith.constant 0.000000e+00 : f32
    %165 = vector.broadcast %cst_15 : f32 to vector<8x128xf32>
    %166 = arith.maximumf %164, %165 : vector<8x128xf32>
    %167 = vector.broadcast %160 : f32 to vector<8x128xf32>
    %168 = arith.mulf %166, %167 : vector<8x128xf32>
    %169 = arith.addf %157, %168 : vector<8x128xf32>
    %c14 = arith.constant 14 : index
    %170 = memref.load %arg1[%c14] : memref<49xf32, #tpu.memory_space<smem>>
    %c30 = arith.constant 30 : index
    %171 = memref.load %arg1[%c30] : memref<49xf32, #tpu.memory_space<smem>>
    %c46 = arith.constant 46 : index
    %172 = memref.load %arg1[%c46] : memref<49xf32, #tpu.memory_space<smem>>
    %173 = vector.broadcast %170 : f32 to vector<8x128xf32>
    %174 = arith.mulf %0, %173 : vector<8x128xf32>
    %175 = vector.broadcast %171 : f32 to vector<8x128xf32>
    %176 = arith.addf %174, %175 : vector<8x128xf32>
    %cst_16 = arith.constant 0.000000e+00 : f32
    %177 = vector.broadcast %cst_16 : f32 to vector<8x128xf32>
    %178 = arith.maximumf %176, %177 : vector<8x128xf32>
    %179 = vector.broadcast %172 : f32 to vector<8x128xf32>
    %180 = arith.mulf %178, %179 : vector<8x128xf32>
    %181 = arith.addf %169, %180 : vector<8x128xf32>
    %c15 = arith.constant 15 : index
    %182 = memref.load %arg1[%c15] : memref<49xf32, #tpu.memory_space<smem>>
    %c31 = arith.constant 31 : index
    %183 = memref.load %arg1[%c31] : memref<49xf32, #tpu.memory_space<smem>>
    %c47 = arith.constant 47 : index
    %184 = memref.load %arg1[%c47] : memref<49xf32, #tpu.memory_space<smem>>
    %185 = vector.broadcast %182 : f32 to vector<8x128xf32>
    %186 = arith.mulf %0, %185 : vector<8x128xf32>
    %187 = vector.broadcast %183 : f32 to vector<8x128xf32>
    %188 = arith.addf %186, %187 : vector<8x128xf32>
    %cst_17 = arith.constant 0.000000e+00 : f32
    %189 = vector.broadcast %cst_17 : f32 to vector<8x128xf32>
    %190 = arith.maximumf %188, %189 : vector<8x128xf32>
    %191 = vector.broadcast %184 : f32 to vector<8x128xf32>
    %192 = arith.mulf %190, %191 : vector<8x128xf32>
    %193 = arith.addf %181, %192 : vector<8x128xf32>
    %c48 = arith.constant 48 : index
    %194 = memref.load %arg1[%c48] : memref<49xf32, #tpu.memory_space<smem>>
    %195 = vector.broadcast %194 : f32 to vector<8x128xf32>
    %196 = arith.addf %193, %195 : vector<8x128xf32>
    %c0_18 = arith.constant 0 : index
    %c0_19 = arith.constant 0 : index
    %197 = vector.load %arg3[%c0_18, %c0_19] : memref<8x128xf32, #tpu.memory_space<vmem>>, vector<8x128xf32>
    tpu.vector_store %arg3[%c0_18, %c0_19], %196 {strides = array<i32>} : memref<8x128xf32, #tpu.memory_space<vmem>>, vector<8x128xf32>,
    return
  }
  func.func @transform_0(%arg0: i32) -> i32 {
    %c0_i32 = arith.constant 0 : i32
    %c0_i32_0 = arith.constant 0 : i32
    return %c0_i32 : i32
  }
  func.func @transform_1(%arg0: i32) -> (i32, i32) {
    %c0_i32 = arith.constant 0 : i32
    %c0_i32_0 = arith.constant 0 : i32
    return %arg0, %c0_i32 : i32, i32
  }
  func.func @transform_2(%arg0: i32) -> (i32, i32) {
    %c0_i32 = arith.constant 0 : i32
    %c0_i32_0 = arith.constant 0 : i32
    return %arg0, %c0_i32 : i32, i32
  }
}

</mosaic_0001>

<bundles_post_ra>
// kernel: dvn_forward.1
= control target key start
LH: loop header
LB: loop body
LE: loop exit
PB: predicated region body
PF: predicated region fallthrough
CT: control target
= control target key end

     0   :  { %7 = vsyncpa [#allocation4], 0  ;;  %s488_s0 = inlined_call_operand.vmem [shape: f32[49], index: 0, kind: input, shape index: {}]   ;;  %s489_s1 = inlined_call_operand.vmem [shape: f32[8,128], index: 1, kind: input, shape index: {}]   ;;  %s490_s2 = inlined_call_operand.hbm [shape: f32[8,128], index: 2, kind: output, shape index: {}]  }
   0x1   :  { %8 = vsyncpa [#allocation3], 0  ;;  %s15_s11 = sshll.u32 %s488_s0, 4  ;;  %s16_s11 = int_to_ptr.vmem [resolvable:$true] %s15_s11 }
   0x2   :  { %s271_s12 = scalar_lea.vmem %s16_s11, 16  ;;  %p276_p1 = scmp.lt.s32.totalorder %s16_s11, %s16_s11 }
   0x3   :  { %p272_p0 = scmp.ne.s32.totalorder %s16_s11, %s271_s12  ;;  %p277_p2 = scmp.lt.s32.totalorder %s271_s12, %s271_s12 }
   0x5   :  { %p278_p3 = por %p277_p2, %p276_p1 }
   0x7   :  { %p279_p4 = pnand %p278_p3, %p272_p0 }
   0x9   :  { %282 = shalt.err (!%p279_p4)
}
   0xa   :  { %s309_s13 = smov [#allocation2]  }
   0xb   :  { %18 = dma.vmem_to_smem %s16_s11, 16, %s309_s13, [#allocation4]  }
   0xc   :  { %305 = dma.done.wait [#allocation4], 16  }
   0xd   :  { %306 = vsyncadd [#allocation4], 4294967280 }
   0xe   :  { %24 = sfence }
   0xf   :  { %s26_s14 = sld [smem:[#allocation2]]  ;;  %s223_s17 = sld [smem:[#allocation2 + $0x1]]  ;;  %v338_v0 = vld [vmem:[%s489_s1] sm:$0xff] }
  0x10   :  { %s221_s15 = sld [smem:[#allocation2 + $0x10]]  ;;  %s224_s18 = sld [smem:[#allocation2 + $0x11]] }
  0x11   :  { %s329_s16 = sld [smem:[#allocation2 + $0x20]]  ;;  %s331_s0 = sld [smem:[#allocation2 + $0x21]] }
  0x12   :  { %s226_s19 = sld [smem:[#allocation2 + $0x2]]  ;;  %s229_s24 = sld [smem:[#allocation2 + $0x3]] }
  0x13   :  { %s333_s20 = sld [smem:[#allocation2 + $0x12]]  ;;  %s342_s25 = sld [smem:[#allocation2 + $0x13]] }
  0x14   :  { %s340_s23 = sld [smem:[#allocation2 + $0x22]]  ;;  %s344_s26 = sld [smem:[#allocation2 + $0x23]] }
  0x15   :  { %v29_v1 = vstv %s26_s14  ;;  %s346_s27 = sld [smem:[#allocation2 + $0x4]]  ;;  %v40_v4 = vstv %s223_s17  ;;  %s353_s29 = sld [smem:[#allocation2 + $0x5]] }
  0x16   :  { %v31_v2 = vstv %s221_s15  ;;  %s348_s28 = sld [smem:[#allocation2 + $0x14]]  ;;  %v30_v3 = vmul.f32 %v29_v1, %v338_v0  ;;  %v41_v5 = vmul.f32 %v40_v4, %v338_v0  ;;  %v42_v6 = vstv %s224_s18  ;;  %s356_s30 = sld [smem:[#allocation2 + $0x15]] }
  0x17   :  { %s351_s1 = sld [smem:[#allocation2 + $0x24]]  ;;  %v34_v8 = vstv %s329_s16  ;;  %s360_s3 = sld [smem:[#allocation2 + $0x6]]  ;;  %v45_v12 = vstv %s331_s0 }
  0x18   :  { %v32_v7 = vadd.f32 %v31_v2, %v30_v3  ;;  %v51_v9 = vstv %s226_s19  ;;  %s362_s4 = sld [smem:[#allocation2 + $0x16]]  ;;  %v43_v11 = vadd.f32 %v42_v6, %v41_v5  ;;  %v62_v14 = vstv %s229_s24  ;;  %s366_s5 = sld [smem:[#allocation2 + $0x25]] }
  0x19   :  { %v53_v10 = vstv %s333_s20  ;;  %v52_v13 = vmul.f32 %v51_v9, %v338_v0  ;;  %s368_s6 = sld [smem:[#allocation2 + $0x7]]  ;;  %v63_v17 = vmul.f32 %v62_v14, %v338_v0  ;;  %v64_v18 = vstv %s342_s25  ;;  %s373_s7 = sld [smem:[#allocation2 + $0x26]] }
  0x1a   :  { %v33_v15 = vmax.f32 %v32_v7, 0.0  ;;  %v56_v16 = vstv %s340_s23  ;;  %s375_s8 = sld [smem:[#allocation2 + $0x17]]  ;;  %v44_v19 = vmax.f32 %v43_v11, 0.0  ;;  %s379_s9 = sld [smem:[#allocation2 + $0x8]]  ;;  %v67_v25 = vstv %s344_s26 }
  0x1b   :  { %v54_v20 = vadd.f32 %v53_v10, %v52_v13  ;;  %v73_v21 = vstv %s346_s27  ;;  %s381_s10 = sld [smem:[#allocation2 + $0x18]]  ;;  %v65_v24 = vadd.f32 %v64_v18, %v63_v17  ;;  %s385_s11 = sld [smem:[#allocation2 + $0x27]]  ;;  %v84_v29 = vstv %s353_s29 }
  0x1c   :  { %v75_v22 = vstv %s348_s28  ;;  %v35_v23 = vmul.f32 %v34_v8, %v33_v15  ;;  %v74_v26 = vmul.f32 %v73_v21, %v338_v0  ;;  %v46_v27 = vmul.f32 %v45_v12, %v44_v19  ;;  %s389_s12 = sld [smem:[#allocation2 + $0x9]]  ;;  %s395_s14 = sld [smem:[#allocation2 + $0x28]] }
  0x1d   :  { %v55_v28 = vmax.f32 %v54_v20, 0.0  ;;  %v86_v30 = vstv %s356_s30  ;;  %s391_s13 = sld [smem:[#allocation2 + $0x19]]  ;;  %v66_v31 = vmax.f32 %v65_v24, 0.0  ;;  %v78_v33 = vstv %s351_s1  ;;  %s399_s15 = sld [smem:[#allocation2 + $0xa]] }
  0x1e   :  { %v76_v32 = vadd.f32 %v75_v22, %v74_v26  ;;  %v85_v34 = vmul.f32 %v84_v29, %v338_v0  ;;  %v47_v35 = vadd.f32 %v46_v27, %v35_v23  ;;  %v95_v37 = vstv %s360_s3  ;;  %s401_s16 = sld [smem:[#allocation2 + $0x1a]]  ;;  %s404_s17 = sld [smem:[#allocation2 + $0x29]] }
  0x1f   :  { %v57_v36 = vmul.f32 %v56_v16, %v55_v28  ;;  %v97_v38 = vstv %s362_s4  ;;  %v68_v39 = vmul.f32 %v67_v25, %v66_v31  ;;  %v96_v42 = vmul.f32 %v95_v37, %v338_v0  ;;  %s409_s18 = sld [smem:[#allocation2 + $0xb]]  ;;  %s414_s19 = sld [smem:[#allocation2 + $0x2a]] }
  0x20   :  { %v77_v40 = vmax.f32 %v76_v32, 0.0  ;;  %v87_v41 = vadd.f32 %v86_v30, %v85_v34  ;;  %v89_v44 = vstv %s366_s5  ;;  %v106_v45 = vstv %s368_s6  ;;  %s411_s0 = sld [smem:[#allocation2 + $0x1b]]  ;;  %s419_s20 = sld [smem:[#allocation2 + $0xc]] }
  0x21   :  { %v58_v43 = vadd.f32 %v57_v36, %v47_v35  ;;  %v108_v46 = vstv %s375_s8  ;;  %v98_v49 = vadd.f32 %v97_v38, %v96_v42  ;;  %v107_v50 = vmul.f32 %v106_v45, %v338_v0  ;;  %s421_s21 = sld [smem:[#allocation2 + $0x1c]]  ;;  %s424_s22 = sld [smem:[#allocation2 + $0x2b]] }
  0x22   :  { %v79_v47 = vmul.f32 %v78_v33, %v77_v40  ;;  %v88_v48 = vmax.f32 %v87_v41, 0.0  ;;  %v100_v52 = vstv %s373_s7  ;;  %v117_v53 = vstv %s379_s9  ;;  %s429_s23 = sld [smem:[#allocation2 + $0xd]]  ;;  %s434_s25 = sld [smem:[#allocation2 + $0x2c]] }
  0x23   :  { %v69_v51 = vadd.f32 %v68_v39, %v58_v43  ;;  %v119_v54 = vstv %s381_s10  ;;  %v99_v56 = vmax.f32 %v98_v49, 0.0  ;;  %v109_v57 = vadd.f32 %v108_v46, %v107_v50  ;;  %s431_s24 = sld [smem:[#allocation2 + $0x1d]]  ;;  %s439_s26 = sld [smem:[#allocation2 + $0xe]] }
  0x24   :  { %v90_v55 = vmul.f32 %v89_v44, %v88_v48  ;;  %v118_v58 = vmul.f32 %v117_v53, %v338_v0  ;;  %v111_v60 = vstv %s385_s11  ;;  %v128_v61 = vstv %s389_s12  ;;  %s441_s27 = sld [smem:[#allocation2 + $0x1e]]  ;;  %s444_s28 = sld [smem:[#allocation2 + $0x2d]] }
  0x25   :  { %v80_v59 = vadd.f32 %v79_v47, %v69_v51  ;;  %v130_v62 = vstv %s391_s13  ;;  %v101_v63 = vmul.f32 %v100_v52, %v99_v56  ;;  %v110_v1 = vmax.f32 %v109_v57, 0.0  ;;  %s449_s1 = sld [smem:[#allocation2 + $0xf]]  ;;  %s457_s30 = sld [smem:[#allocation2 + $0x2e]] }
  0x26   :  { %v120_v2 = vadd.f32 %v119_v54, %v118_v58  ;;  %v129_v3 = vmul.f32 %v128_v61, %v338_v0  ;;  %v122_v5 = vstv %s395_s14  ;;  %v139_v6 = vstv %s399_s15  ;;  %s451_s29 = sld [smem:[#allocation2 + $0x1f]]  ;;  %s268_s4 = sld [smem:[#allocation2 + $0x30]] }
  0x27   :  { %v91_v4 = vadd.f32 %v90_v55, %v80_v59  ;;  %v141_v7 = vstv %s401_s16  ;;  %v112_v8 = vmul.f32 %v111_v60, %v110_v1  ;;  %v140_v11 = vmul.f32 %v139_v6, %v338_v0  ;;  %s463_s3 = sld [smem:[#allocation2 + $0x2f]]  ;;  %s310_s5 = smov [#allocation5]  }
  0x28   :  { %v121_v9 = vmax.f32 %v120_v2, 0.0  ;;  %v131_v10 = vadd.f32 %v130_v62, %v129_v3  ;;  %v133_v13 = vstv %s404_s17  ;;  %v150_v14 = vstv %s409_s18  ;;  %s212_s6 = sshll.u32 %s310_s5, 4  ;;  %s213_s6 = int_to_ptr.vmem [resolvable:$true] %s212_s6 }
  0x29   :  { %v102_v12 = vadd.f32 %v101_v63, %v91_v4  ;;  %v152_v15 = vstv %s411_s0  ;;  %v142_v18 = vadd.f32 %v141_v7, %v140_v11  ;;  %v151_v19 = vmul.f32 %v150_v14, %v338_v0  ;;  %s283_s7 = scalar_lea.vmem %s213_s6, 128  ;;  %p288_p6 = scmp.lt.s32.totalorder %s213_s6, %s213_s6 }
  0x2a   :  { %v123_v16 = vmul.f32 %v122_v5, %v121_v9  ;;  %v132_v17 = vmax.f32 %v131_v10, 0.0  ;;  %v144_v21 = vstv %s414_s19  ;;  %v161_v22 = vstv %s419_s20  ;;  %p284_p5 = scmp.ne.s32.totalorder %s213_s6, %s283_s7  ;;  %p289_p7 = scmp.lt.s32.totalorder %s283_s7, %s283_s7 }
  0x2b   :  { %v113_v20 = vadd.f32 %v112_v8, %v102_v12  ;;  %v163_v23 = vstv %s421_s21  ;;  %v143_v25 = vmax.f32 %v142_v18, 0.0  ;;  %v153_v26 = vadd.f32 %v152_v15, %v151_v19 }
  0x2c   :  { %v134_v24 = vmul.f32 %v133_v13, %v132_v17  ;;  %v162_v27 = vmul.f32 %v161_v22, %v338_v0  ;;  %v155_v29 = vstv %s424_s22  ;;  %v172_v30 = vstv %s429_s23  ;;  %p290_p8 = por %p289_p7, %p288_p6 }
  0x2d   :  { %v124_v28 = vadd.f32 %v123_v16, %v113_v20  ;;  %v174_v31 = vstv %s431_s24  ;;  %v145_v32 = vmul.f32 %v144_v21, %v143_v25  ;;  %v154_v33 = vmax.f32 %v153_v26, 0.0 }
  0x2e   :  { %v164_v34 = vadd.f32 %v163_v23, %v162_v27  ;;  %v173_v35 = vmul.f32 %v172_v30, %v338_v0  ;;  %v166_v37 = vstv %s434_s25  ;;  %v183_v38 = vstv %s439_s26  ;;  %p291_p9 = pnand %p290_p8, %p284_p5 }
  0x2f   :  { %v135_v36 = vadd.f32 %v134_v24, %v124_v28  ;;  %v185_v39 = vstv %s441_s27  ;;  %v156_v40 = vmul.f32 %v155_v29, %v154_v33  ;;  %v184_v43 = vmul.f32 %v183_v38, %v338_v0 }
  0x30   :  { %v165_v41 = vmax.f32 %v164_v34, 0.0  ;;  %v175_v42 = vadd.f32 %v174_v31, %v173_v35  ;;  %v177_v45 = vstv %s444_s28  ;;  %v194_v46 = vstv %s449_s1 }
  0x31   :  { %v146_v44 = vadd.f32 %v145_v32, %v135_v36  ;;  %v196_v47 = vstv %s451_s29  ;;  %v186_v50 = vadd.f32 %v185_v39, %v184_v43  ;;  %v195_v51 = vmul.f32 %v194_v46, %v338_v0 }
  0x32   :  { %v167_v48 = vmul.f32 %v166_v37, %v165_v41  ;;  %v176_v49 = vmax.f32 %v175_v42, 0.0  ;;  %v188_v53 = vstv %s457_s30  ;;  %v199_v58 = vstv %s463_s3 }
  0x33   :  { %v157_v52 = vadd.f32 %v156_v40, %v146_v44  ;;  %v187_v55 = vmax.f32 %v186_v50, 0.0  ;;  %v197_v56 = vadd.f32 %v196_v47, %v195_v51  ;;  %v203_v1 = vstv %s268_s4 }
  0x34   :  { %v178_v54 = vmul.f32 %v177_v45, %v176_v49 }
  0x35   :  { %v168_v57 = vadd.f32 %v167_v48, %v157_v52  ;;  %v189_v59 = vmul.f32 %v188_v53, %v187_v55  ;;  %v198_v60 = vmax.f32 %v197_v56, 0.0 }
  0x37   :  { %v179_v61 = vadd.f32 %v178_v54, %v168_v57  ;;  %v200_v62 = vmul.f32 %v199_v58, %v198_v60 }
  0x39   :  { %v190_v63 = vadd.f32 %v189_v59, %v179_v61 }
  0x3b   :  { %v201_v2 = vadd.f32 %v200_v62, %v190_v63 }
  0x3d   :  { %v204_v3 = vadd.f32 %v203_v1, %v201_v2 }
  0x3f   :  { %205 = vst [vmem:[#allocation5] sm:$0xff] %v204_v3 }
  0x40   :  { %294 = shalt.err (!%p291_p9)
}
  0x41   :  { %s295_s10 = scalar_lea.hbm %s490_s2, 128 }
  0x42   :  { %p296_p10 = scmp.ne.s32.totalorder %s490_s2, %s295_s10  ;;  %p299_p11 = scmp.lt.u32.totalorder %s295_s10, %s490_s2 }
  0x44   :  { %p301_p12 = pnand %p299_p11, %p296_p10 }
  0x46   :  { %304 = shalt.err (!%p301_p12)
}
  0x47   :  { %215 = dma.vmem_to_hbm [thread:$0]  %s213_s6, 128, %s490_s2, [#allocation3]  }
  0x48   :  { %307 = dma.done.wait [#allocation3], 128  }
  0x49   :  { %308 = vsyncadd [#allocation3], 4294967168 }
  0x4a   :  { %219 = vsyncpa [#allocation3], 1 }
  0x4b   :  { %220 = vsyncpa [#allocation4], 1 }

</bundles_post_ra>
